<compile_context>
chip_gen: v5e
topology: v5e:2x2
jax: 0.10.0
libtpu: 0.0.40
codegen_flags: <defaults>
</compile_context>

<pallas_src>
import functools

import jax
import jax.numpy as jnp
from jax import lax
from jax.experimental import pallas as pl
from jax.experimental.pallas import tpu as pltpu


def _attn_kernel(*refs, num_heads, block_b, mask_mode, approx_recip):
    """One grid step = (block_b batch elements) x (one T tile)."""
    if mask_mode == "lengths":
        lens_ref, q_ref, kv_ref, o_ref, o_acc = refs
        mask_ref = None
    elif mask_mode == "dense":
        q_ref, kv_ref, mask_ref, o_ref, o_acc = refs
        lens_ref = None
    else:
        q_ref, kv_ref, o_ref, o_acc = refs
        mask_ref = lens_ref = None

    Tt, E = q_ref.shape[1], q_ref.shape[2]
    S = kv_ref.shape[1]
    H = num_heads
    D = E // H

    b0 = pl.program_id(0) * block_b  # global batch offset of this block

    # block_b / H are small and static -> fully unrolled; each (lb, h)
    # iteration's temporaries die at the o_acc write, bounding live state.
    for lb in range(block_b):
        if mask_mode == "dense":
            m = mask_ref[lb, 0].astype(jnp.float32)                      # (Tt, S)
        elif mask_mode == "lengths":
            # Build the additive key-padding mask in-kernel from an SMEM scalar
            # (removes the O(T*S) f32 mask HBM stream entirely).
            length = lens_ref[b0 + lb]
            col = lax.broadcasted_iota(jnp.int32, (Tt, S), 1)
            m = jnp.where(col < length, 0.0, -1e9).astype(jnp.float32)   # (Tt, S)
        else:
            m = None

        for h in range(H):
            lo = h * D
            qh = q_ref[lb, :, lo:lo + D]     # (Tt, D) static lane slice off the ref
            kvh = kv_ref[lb, :, lo:lo + D]   # (S, D)  shared K == V (no projections)

            # scores = Qh @ Kh^T, contracting over D, f32 accumulation on the MXU.
            s = lax.dot_general(qh, kvh, (((1,), (1,)), ((), ())),
                                preferred_element_type=jnp.float32)      # (Tt, S)
            if m is not None:
                s = s + m

            # numerically stable softmax in f32; keep probabilities UNnormalized
            # and normalize the (Tt, D) output instead of the (Tt, S) probs.
            s_max = jnp.max(s, axis=-1, keepdims=True)
            p = jnp.exp(s - s_max)
            denom = jnp.sum(p, axis=-1, keepdims=True)                   # (Tt, 1)

            # TODO(synk): dropout on attn_probs skipped (p=0.0 / inference) -> no-op.
            # TODO(synk): self.scaling is defined but never applied in the PyTorch
            #             forward -> faithfully omitted here as well.

            oh = lax.dot_general(p.astype(kvh.dtype), kvh,
                                 (((1,), (0,)), ((), ())),
                                 preferred_element_type=jnp.float32)     # (Tt, D)
            # approx=True (EUP vrcp, free slot) only when the output is bf16;
            # approx=False keeps exact f32 parity with the reference softmax.
            oh = oh * pl.reciprocal(denom, approx=approx_recip)

            # write-as-you-go into the persistent f32 VMEM scratch
            o_acc[lb, :, lo:lo + D] = oh

    # single lane-dense (Bb, Tt, E) cast + store
    o_ref[...] = o_acc[...].astype(o_ref.dtype)


def _pick_tile_t(T, cap=256):
    """Largest T tile <= cap that divides T and is a multiple of 8 (or full T)."""
    if T <= cap:
        return T
    for t in range(cap - cap % 8, 7, -8):
        if T % t == 0:
            return t
    return T


def _pick_block_b(B, per_batch_block_bytes, cap_bytes=4 << 20, max_bb=8):
    """Largest divisor of B (<= max_bb) whose double-buffered block fits cap."""
    best = 1
    for bb in range(1, min(B, max_bb) + 1):
        if B % bb == 0 and 2 * bb * per_batch_block_bytes <= cap_bytes:
            best = bb
    return best


def figurative_attention(hidden_states, key_value_states, attention_mask,
                         num_heads, kv_lengths=None):
    """Pallas implementation of FigurativeAttention.forward.

    hidden_states:     (B, T, E)
    key_value_states:  (B, S, E)
    attention_mask:    (B, 1, T, S) additive mask, or None
    kv_lengths:        optional (B,) int lengths; mask built in-kernel (faster
                       alternative to streaming a dense additive mask)
    returns:           (B, T, E)
    """
    B, T, E = hidden_states.shape
    S = key_value_states.shape[1]
    H = num_heads
    assert E % H == 0, "embed_dim must be divisible by num_heads"

    if attention_mask is not None and kv_lengths is not None:
        raise ValueError("pass either attention_mask or kv_lengths, not both")
    if attention_mask is not None:
        # mirror the PyTorch module: exact (B, 1, T, S) additive mask required
        assert attention_mask.shape == (B, 1, T, S)
        mask_mode = "dense"
    elif kv_lengths is not None:
        assert kv_lengths.shape == (B,)
        mask_mode = "lengths"
    else:
        mask_mode = "none"

    itemsize = jnp.dtype(hidden_states.dtype).itemsize
    Tt = _pick_tile_t(T)
    mask_item = (jnp.dtype(attention_mask.dtype).itemsize
                 if mask_mode == "dense" else 0)
    per_batch = (Tt * E + S * E + Tt * E) * itemsize + Tt * S * mask_item
    Bb = _pick_block_b(B, per_batch)

    out_dtype = hidden_states.dtype
    approx_recip = jnp.dtype(out_dtype) == jnp.dtype(jnp.bfloat16)

    kernel = functools.partial(_attn_kernel, num_heads=H, block_b=Bb,
                               mask_mode=mask_mode, approx_recip=approx_recip)

    # index maps (explicit arity per mode; lengths mode gets the SMEM ref too)
    if mask_mode == "lengths":
        q_map = lambda bi, ti, lens: (bi, ti, 0)
        kv_map = lambda bi, ti, lens: (bi, 0, 0)
        o_map = lambda bi, ti, lens: (bi, ti, 0)
        mask_map = None
    else:
        q_map = lambda bi, ti: (bi, ti, 0)
        kv_map = lambda bi, ti: (bi, 0, 0)
        o_map = lambda bi, ti: (bi, ti, 0)
        mask_map = lambda bi, ti: (bi, 0, ti, 0)

    in_specs = [
        pl.BlockSpec((Bb, Tt, E), q_map),    # q (hidden_states)
        pl.BlockSpec((Bb, S, E), kv_map),    # kv (shared K/V, re-fetched only per batch block)
    ]
    operands = [hidden_states, key_value_states]
    num_prefetch = 0
    if mask_mode == "dense":
        in_specs.append(pl.BlockSpec((Bb, 1, Tt, S), mask_map))
        operands.append(attention_mask)
    elif mask_mode == "lengths":
        num_prefetch = 1
        operands = [kv_lengths.astype(jnp.int32)] + operands

    # scoped-VMEM budget: double-buffered blocks + f32 scratch + per-head temps
    block_bytes = Bb * per_batch
    scratch_bytes = Bb * Tt * E * 4
    temp_bytes = 4 * Tt * S * 4 + Tt * E * 4
    vmem_limit = 2 * block_bytes + scratch_bytes + temp_bytes + (2 << 20)
    vmem_limit = int(min(max(vmem_limit, 8 << 20), 64 << 20))

    grid = (B // Bb, T // Tt)

    out = pl.pallas_call(
        kernel,
        out_shape=jax.ShapeDtypeStruct((B, T, E), out_dtype),
        grid_spec=pltpu.PrefetchScalarGridSpec(
            num_scalar_prefetch=num_prefetch,
            grid=grid,
            in_specs=in_specs,
            out_specs=pl.BlockSpec((Bb, Tt, E), o_map),
            scratch_shapes=[pltpu.VMEM((Bb, Tt, E), jnp.float32)],
        ),
        compiler_params=pltpu.CompilerParams(
            dimension_semantics=("parallel", "parallel"),
            vmem_limit_bytes=vmem_limit,
        ),
    )(*operands)
    return out


def _reference(hidden_states, key_value_states, attention_mask, num_heads):
    """Pure-JAX f32 reference mirroring the PyTorch forward."""
    h = hidden_states.astype(jnp.float32)
    kv = key_value_states.astype(jnp.float32)
    B, T, E = h.shape
    S = kv.shape[1]
    H = num_heads
    D = E // H
    q = h.reshape(B, T, H, D).transpose(0, 2, 1, 3)
    k = kv.reshape(B, S, H, D).transpose(0, 2, 1, 3)
    w = jnp.einsum("bhtd,bhsd->bhts", q, k)
    if attention_mask is not None:
        w = w + attention_mask.astype(jnp.float32)
    p = jax.nn.softmax(w, axis=-1)
    o = jnp.einsum("bhts,bhsd->bhtd", p, k)
    return o.transpose(0, 2, 1, 3).reshape(B, T, E)


if __name__ == "__main__":
    # Small shapes consistent with the module: batch=2, seq=8, hidden=32, heads=4.
    B, T, S, E, H = 2, 8, 8, 32, 4
    key = jax.random.PRNGKey(0)
    k1, k2, k3 = jax.random.split(key, 3)

    hidden_states = jax.random.normal(k1, (B, T, E), dtype=jnp.float32)
    key_value_states = jax.random.normal(k2, (B, S, E), dtype=jnp.float32)

    # (1) dense additive mask path (exact module semantics)
    mask_bits = jax.random.bernoulli(k3, p=0.8, shape=(B, 1, T, S))
    attention_mask = jnp.where(mask_bits, 0.0, -1e9).astype(jnp.float32)
    out = jax.block_until_ready(
        figurative_attention(hidden_states, key_value_states, attention_mask, H))
    ref = _reference(hidden_states, key_value_states, attention_mask, H)
    assert out.shape == (B, T, E)
    assert jnp.allclose(out, ref, atol=1e-5, rtol=1e-5), "mismatch (dense mask)"

    # (2) maskless path (no mask tensor materialized or streamed)
    out_nm = jax.block_until_ready(
        figurative_attention(hidden_states, key_value_states, None, H))
    ref_nm = _reference(hidden_states, key_value_states, None, H)
    assert jnp.allclose(out_nm, ref_nm, atol=1e-5, rtol=1e-5), "mismatch (no mask)"

    # (3) key-padding lengths path (mask built in-kernel from SMEM scalars)
    kv_lengths = jnp.array([S, S - 3], dtype=jnp.int32)
    out_len = jax.block_until_ready(
        figurative_attention(hidden_states, key_value_states, None, H,
                             kv_lengths=kv_lengths))
    len_mask = jnp.where(
        jnp.arange(S)[None, None, None, :] < kv_lengths[:, None, None, None],
        0.0, -1e9).astype(jnp.float32)
    len_mask = jnp.broadcast_to(len_mask, (B, 1, T, S))
    ref_len = _reference(hidden_states, key_value_states, len_mask, H)
    assert jnp.allclose(out_len, ref_len, atol=1e-5, rtol=1e-5), "mismatch (lengths)"

    # (4) bf16 path (bf16 MXU operands, f32 accumulation/softmax, approx recip)
    h_bf = hidden_states.astype(jnp.bfloat16)
    kv_bf = key_value_states.astype(jnp.bfloat16)
    out_bf = jax.block_until_ready(figurative_attention(h_bf, kv_bf, None, H))
    ref_bf = _reference(h_bf, kv_bf, None, H)
    assert jnp.allclose(out_bf.astype(jnp.float32), ref_bf,
                        atol=3e-2, rtol=3e-2), "mismatch (bf16)"

    print("KERNEL_OK")
</pallas_src>

<mosaic_0001>
module attributes {stable_mosaic.version = 11 : i64} {
  func.func @_attn_kernel(%arg0: i32, %arg1: i32, %arg2: memref<2x8x32xf32, #tpu.memory_space<vmem>>, %arg3: memref<2x8x32xf32, #tpu.memory_space<vmem>>, %arg4: memref<2x1x8x8xf32, #tpu.memory_space<vmem>>, %arg5: memref<2x8x32xf32, #tpu.memory_space<vmem>>, %arg6: memref<2x8x32xf32, #tpu.memory_space<vmem>>) attributes {dimension_semantics = [#tpu.dimension_semantics<parallel>, #tpu.dimension_semantics<parallel>], iteration_bounds = array<i64: 1, 1>, scalar_prefetch = 0 : i64, scratch_operands = 1 : i64, tpu.core_type = #tpu.core_type<tc>, window_params = [{transform_indices = @transform_0, window_bounds = array<i64: 2, 8, 32>}, {transform_indices = @transform_1, window_bounds = array<i64: 2, 8, 32>}, {transform_indices = @transform_2, window_bounds = array<i64: 2, 1, 8, 8>}, {transform_indices = @transform_3, window_bounds = array<i64: 2, 8, 32>}]} {
    %c0 = arith.constant 0 : index
    %c0_0 = arith.constant 0 : index
    %c0_1 = arith.constant 0 : index
    %c0_2 = arith.constant 0 : index
    %0 = vector.load %arg4[%c0, %c0_0, %c0_1, %c0_2] : memref<2x1x8x8xf32, #tpu.memory_space<vmem>>, vector<1x1x8x8xf32>
    %1 = vector.shape_cast %0 : vector<1x1x8x8xf32> to vector<8x8xf32>
    %c0_3 = arith.constant 0 : index
    %c0_4 = arith.constant 0 : index
    %c0_5 = arith.constant 0 : index
    %2 = vector.load %arg2[%c0_3, %c0_4, %c0_5] : memref<2x8x32xf32, #tpu.memory_space<vmem>>, vector<1x8x8xf32>
    %3 = vector.shape_cast %2 : vector<1x8x8xf32> to vector<8x8xf32>
    %c0_6 = arith.constant 0 : index
    %c0_7 = arith.constant 0 : index
    %c0_8 = arith.constant 0 : index
    %4 = vector.load %arg3[%c0_6, %c0_7, %c0_8] : memref<2x8x32xf32, #tpu.memory_space<vmem>>, vector<1x8x8xf32>
    %5 = vector.shape_cast %4 : vector<1x8x8xf32> to vector<8x8xf32>
    %cst = arith.constant dense<0.000000e+00> : vector<8x8xf32>
    %6 = tpu.matmul %3, %5, %cst {dimension_numbers = #tpu.dot_dimension_numbers<[1], [1], [0], [0], [0, 0, 1, 0], [], []>} : vector<8x8xf32>, vector<8x8xf32>, vector<8x8xf32> -> vector<8x8xf32>
    %7 = arith.addf %6, %1 : vector<8x8xf32>
    %cst_9 = arith.constant dense<0xFF800000> : vector<8xf32>
    %8 = vector.multi_reduction <maximumf>, %7, %cst_9 [1] : vector<8x8xf32> to vector<8xf32>
    %9 = vector.shape_cast %8 : vector<8xf32> to vector<8x1xf32>
    %10 = vector.broadcast %9 : vector<8x1xf32> to vector<8x8xf32>
    %11 = arith.subf %7, %10 : vector<8x8xf32>
    %12 = math.exp %11 : vector<8x8xf32>
    %cst_10 = arith.constant dense<0.000000e+00> : vector<8xf32>
    %13 = vector.multi_reduction <add>, %12, %cst_10 [1] : vector<8x8xf32> to vector<8xf32>
    %14 = vector.shape_cast %13 : vector<8xf32> to vector<8x1xf32>
    %cst_11 = arith.constant dense<0.000000e+00> : vector<8x8xf32>
    %15 = tpu.matmul %12, %5, %cst_11 {dimension_numbers = #tpu.dot_dimension_numbers<[1], [0], [0], [1], [0, 0, 1, 1], [], []>} : vector<8x8xf32>, vector<8x8xf32>, vector<8x8xf32> -> vector<8x8xf32>
    %16 = tpu.reciprocal %14 : vector<8x1xf32> -> vector<8x1xf32>
    %17 = vector.broadcast %16 : vector<8x1xf32> to vector<8x8xf32>
    %18 = arith.mulf %15, %17 : vector<8x8xf32>
    %c0_12 = arith.constant 0 : index
    %c0_13 = arith.constant 0 : index
    %c0_14 = arith.constant 0 : index
    %19 = vector.load %arg6[%c0_12, %c0_13, %c0_14] : memref<2x8x32xf32, #tpu.memory_space<vmem>>, vector<1x8x8xf32>
    %20 = vector.shape_cast %19 : vector<1x8x8xf32> to vector<8x8xf32>
    %21 = vector.shape_cast %18 : vector<8x8xf32> to vector<1x8x8xf32>
    tpu.vector_store %arg6[%c0_12, %c0_13, %c0_14], %21 {strides = array<i32>} : memref<2x8x32xf32, #tpu.memory_space<vmem>>, vector<1x8x8xf32>,
    %c0_15 = arith.constant 0 : index
    %c0_16 = arith.constant 0 : index
    %c8 = arith.constant 8 : index
    %22 = vector.load %arg2[%c0_15, %c0_16, %c8] : memref<2x8x32xf32, #tpu.memory_space<vmem>>, vector<1x8x8xf32>
    %23 = vector.shape_cast %22 : vector<1x8x8xf32> to vector<8x8xf32>
    %c0_17 = arith.constant 0 : index
    %c0_18 = arith.constant 0 : index
    %c8_19 = arith.constant 8 : index
    %24 = vector.load %arg3[%c0_17, %c0_18, %c8_19] : memref<2x8x32xf32, #tpu.memory_space<vmem>>, vector<1x8x8xf32>
    %25 = vector.shape_cast %24 : vector<1x8x8xf32> to vector<8x8xf32>
    %cst_20 = arith.constant dense<0.000000e+00> : vector<8x8xf32>
    %26 = tpu.matmul %23, %25, %cst_20 {dimension_numbers = #tpu.dot_dimension_numbers<[1], [1], [0], [0], [0, 0, 1, 0], [], []>} : vector<8x8xf32>, vector<8x8xf32>, vector<8x8xf32> -> vector<8x8xf32>
    %27 = arith.addf %26, %1 : vector<8x8xf32>
    %cst_21 = arith.constant dense<0xFF800000> : vector<8xf32>
    %28 = vector.multi_reduction <maximumf>, %27, %cst_21 [1] : vector<8x8xf32> to vector<8xf32>
    %29 = vector.shape_cast %28 : vector<8xf32> to vector<8x1xf32>
    %30 = vector.broadcast %29 : vector<8x1xf32> to vector<8x8xf32>
    %31 = arith.subf %27, %30 : vector<8x8xf32>
    %32 = math.exp %31 : vector<8x8xf32>
    %cst_22 = arith.constant dense<0.000000e+00> : vector<8xf32>
    %33 = vector.multi_reduction <add>, %32, %cst_22 [1] : vector<8x8xf32> to vector<8xf32>
    %34 = vector.shape_cast %33 : vector<8xf32> to vector<8x1xf32>
    %cst_23 = arith.constant dense<0.000000e+00> : vector<8x8xf32>
    %35 = tpu.matmul %32, %25, %cst_23 {dimension_numbers = #tpu.dot_dimension_numbers<[1], [0], [0], [1], [0, 0, 1, 1], [], []>} : vector<8x8xf32>, vector<8x8xf32>, vector<8x8xf32> -> vector<8x8xf32>
    %36 = tpu.reciprocal %34 : vector<8x1xf32> -> vector<8x1xf32>
    %37 = vector.broadcast %36 : vector<8x1xf32> to vector<8x8xf32>
    %38 = arith.mulf %35, %37 : vector<8x8xf32>
    %c0_24 = arith.constant 0 : index
    %c0_25 = arith.constant 0 : index
    %c8_26 = arith.constant 8 : index
    %39 = vector.load %arg6[%c0_24, %c0_25, %c8_26] : memref<2x8x32xf32, #tpu.memory_space<vmem>>, vector<1x8x8xf32>
    %40 = vector.shape_cast %39 : vector<1x8x8xf32> to vector<8x8xf32>
    %41 = vector.shape_cast %38 : vector<8x8xf32> to vector<1x8x8xf32>
    tpu.vector_store %arg6[%c0_24, %c0_25, %c8_26], %41 {strides = array<i32>} : memref<2x8x32xf32, #tpu.memory_space<vmem>>, vector<1x8x8xf32>,
    %c0_27 = arith.constant 0 : index
    %c0_28 = arith.constant 0 : index
    %c16 = arith.constant 16 : index
    %42 = vector.load %arg2[%c0_27, %c0_28, %c16] : memref<2x8x32xf32, #tpu.memory_space<vmem>>, vector<1x8x8xf32>
    %43 = vector.shape_cast %42 : vector<1x8x8xf32> to vector<8x8xf32>
    %c0_29 = arith.constant 0 : index
    %c0_30 = arith.constant 0 : index
    %c16_31 = arith.constant 16 : index
    %44 = vector.load %arg3[%c0_29, %c0_30, %c16_31] : memref<2x8x32xf32, #tpu.memory_space<vmem>>, vector<1x8x8xf32>
    %45 = vector.shape_cast %44 : vector<1x8x8xf32> to vector<8x8xf32>
    %cst_32 = arith.constant dense<0.000000e+00> : vector<8x8xf32>
    %46 = tpu.matmul %43, %45, %cst_32 {dimension_numbers = #tpu.dot_dimension_numbers<[1], [1], [0], [0], [0, 0, 1, 0], [], []>} : vector<8x8xf32>, vector<8x8xf32>, vector<8x8xf32> -> vector<8x8xf32>
    %47 = arith.addf %46, %1 : vector<8x8xf32>
    %cst_33 = arith.constant dense<0xFF800000> : vector<8xf32>
    %48 = vector.multi_reduction <maximumf>, %47, %cst_33 [1] : vector<8x8xf32> to vector<8xf32>
    %49 = vector.shape_cast %48 : vector<8xf32> to vector<8x1xf32>
    %50 = vector.broadcast %49 : vector<8x1xf32> to vector<8x8xf32>
    %51 = arith.subf %47, %50 : vector<8x8xf32>
    %52 = math.exp %51 : vector<8x8xf32>
    %cst_34 = arith.constant dense<0.000000e+00> : vector<8xf32>
    %53 = vector.multi_reduction <add>, %52, %cst_34 [1] : vector<8x8xf32> to vector<8xf32>
    %54 = vector.shape_cast %53 : vector<8xf32> to vector<8x1xf32>
    %cst_35 = arith.constant dense<0.000000e+00> : vector<8x8xf32>
    %55 = tpu.matmul %52, %45, %cst_35 {dimension_numbers = #tpu.dot_dimension_numbers<[1], [0], [0], [1], [0, 0, 1, 1], [], []>} : vector<8x8xf32>, vector<8x8xf32>, vector<8x8xf32> -> vector<8x8xf32>
    %56 = tpu.reciprocal %54 : vector<8x1xf32> -> vector<8x1xf32>
    %57 = vector.broadcast %56 : vector<8x1xf32> to vector<8x8xf32>
    %58 = arith.mulf %55, %57 : vector<8x8xf32>
    %c0_36 = arith.constant 0 : index
    %c0_37 = arith.constant 0 : index
    %c16_38 = arith.constant 16 : index
    %59 = vector.load %arg6[%c0_36, %c0_37, %c16_38] : memref<2x8x32xf32, #tpu.memory_space<vmem>>, vector<1x8x8xf32>
    %60 = vector.shape_cast %59 : vector<1x8x8xf32> to vector<8x8xf32>
    %61 = vector.shape_cast %58 : vector<8x8xf32> to vector<1x8x8xf32>
    tpu.vector_store %arg6[%c0_36, %c0_37, %c16_38], %61 {strides = array<i32>} : memref<2x8x32xf32, #tpu.memory_space<vmem>>, vector<1x8x8xf32>,
    %c0_39 = arith.constant 0 : index
    %c0_40 = arith.constant 0 : index
    %c24 = arith.constant 24 : index
    %62 = vector.load %arg2[%c0_39, %c0_40, %c24] : memref<2x8x32xf32, #tpu.memory_space<vmem>>, vector<1x8x8xf32>
    %63 = vector.shape_cast %62 : vector<1x8x8xf32> to vector<8x8xf32>
    %c0_41 = arith.constant 0 : index
    %c0_42 = arith.constant 0 : index
    %c24_43 = arith.constant 24 : index
    %64 = vector.load %arg3[%c0_41, %c0_42, %c24_43] : memref<2x8x32xf32, #tpu.memory_space<vmem>>, vector<1x8x8xf32>
    %65 = vector.shape_cast %64 : vector<1x8x8xf32> to vector<8x8xf32>
    %cst_44 = arith.constant dense<0.000000e+00> : vector<8x8xf32>
    %66 = tpu.matmul %63, %65, %cst_44 {dimension_numbers = #tpu.dot_dimension_numbers<[1], [1], [0], [0], [0, 0, 1, 0], [], []>} : vector<8x8xf32>, vector<8x8xf32>, vector<8x8xf32> -> vector<8x8xf32>
    %67 = arith.addf %66, %1 : vector<8x8xf32>
    %cst_45 = arith.constant dense<0xFF800000> : vector<8xf32>
    %68 = vector.multi_reduction <maximumf>, %67, %cst_45 [1] : vector<8x8xf32> to vector<8xf32>
    %69 = vector.shape_cast %68 : vector<8xf32> to vector<8x1xf32>
    %70 = vector.broadcast %69 : vector<8x1xf32> to vector<8x8xf32>
    %71 = arith.subf %67, %70 : vector<8x8xf32>
    %72 = math.exp %71 : vector<8x8xf32>
    %cst_46 = arith.constant dense<0.000000e+00> : vector<8xf32>
    %73 = vector.multi_reduction <add>, %72, %cst_46 [1] : vector<8x8xf32> to vector<8xf32>
    %74 = vector.shape_cast %73 : vector<8xf32> to vector<8x1xf32>
    %cst_47 = arith.constant dense<0.000000e+00> : vector<8x8xf32>
    %75 = tpu.matmul %72, %65, %cst_47 {dimension_numbers = #tpu.dot_dimension_numbers<[1], [0], [0], [1], [0, 0, 1, 1], [], []>} : vector<8x8xf32>, vector<8x8xf32>, vector<8x8xf32> -> vector<8x8xf32>
    %76 = tpu.reciprocal %74 : vector<8x1xf32> -> vector<8x1xf32>
    %77 = vector.broadcast %76 : vector<8x1xf32> to vector<8x8xf32>
    %78 = arith.mulf %75, %77 : vector<8x8xf32>
    %c0_48 = arith.constant 0 : index
    %c0_49 = arith.constant 0 : index
    %c24_50 = arith.constant 24 : index
    %79 = vector.load %arg6[%c0_48, %c0_49, %c24_50] : memref<2x8x32xf32, #tpu.memory_space<vmem>>, vector<1x8x8xf32>
    %80 = vector.shape_cast %79 : vector<1x8x8xf32> to vector<8x8xf32>
    %81 = vector.shape_cast %78 : vector<8x8xf32> to vector<1x8x8xf32>
    tpu.vector_store %arg6[%c0_48, %c0_49, %c24_50], %81 {strides = array<i32>} : memref<2x8x32xf32, #tpu.memory_space<vmem>>, vector<1x8x8xf32>,
    %c1 = arith.constant 1 : index
    %c0_51 = arith.constant 0 : index
    %c0_52 = arith.constant 0 : index
    %c0_53 = arith.constant 0 : index
    %82 = vector.load %arg4[%c1, %c0_51, %c0_52, %c0_53] : memref<2x1x8x8xf32, #tpu.memory_space<vmem>>, vector<1x1x8x8xf32>
    %83 = vector.shape_cast %82 : vector<1x1x8x8xf32> to vector<8x8xf32>
    %c1_54 = arith.constant 1 : index
    %c0_55 = arith.constant 0 : index
    %c0_56 = arith.constant 0 : index
    %84 = vector.load %arg2[%c1_54, %c0_55, %c0_56] : memref<2x8x32xf32, #tpu.memory_space<vmem>>, vector<1x8x8xf32>
    %85 = vector.shape_cast %84 : vector<1x8x8xf32> to vector<8x8xf32>
    %c1_57 = arith.constant 1 : index
    %c0_58 = arith.constant 0 : index
    %c0_59 = arith.constant 0 : index
    %86 = vector.load %arg3[%c1_57, %c0_58, %c0_59] : memref<2x8x32xf32, #tpu.memory_space<vmem>>, vector<1x8x8xf32>
    %87 = vector.shape_cast %86 : vector<1x8x8xf32> to vector<8x8xf32>
    %cst_60 = arith.constant dense<0.000000e+00> : vector<8x8xf32>
    %88 = tpu.matmul %85, %87, %cst_60 {dimension_numbers = #tpu.dot_dimension_numbers<[1], [1], [0], [0], [0, 0, 1, 0], [], []>} : vector<8x8xf32>, vector<8x8xf32>, vector<8x8xf32> -> vector<8x8xf32>
    %89 = arith.addf %88, %83 : vector<8x8xf32>
    %cst_61 = arith.constant dense<0xFF800000> : vector<8xf32>
    %90 = vector.multi_reduction <maximumf>, %89, %cst_61 [1] : vector<8x8xf32> to vector<8xf32>
    %91 = vector.shape_cast %90 : vector<8xf32> to vector<8x1xf32>
    %92 = vector.broadcast %91 : vector<8x1xf32> to vector<8x8xf32>
    %93 = arith.subf %89, %92 : vector<8x8xf32>
    %94 = math.exp %93 : vector<8x8xf32>
    %cst_62 = arith.constant dense<0.000000e+00> : vector<8xf32>
    %95 = vector.multi_reduction <add>, %94, %cst_62 [1] : vector<8x8xf32> to vector<8xf32>
    %96 = vector.shape_cast %95 : vector<8xf32> to vector<8x1xf32>
    %cst_63 = arith.constant dense<0.000000e+00> : vector<8x8xf32>
    %97 = tpu.matmul %94, %87, %cst_63 {dimension_numbers = #tpu.dot_dimension_numbers<[1], [0], [0], [1], [0, 0, 1, 1], [], []>} : vector<8x8xf32>, vector<8x8xf32>, vector<8x8xf32> -> vector<8x8xf32>
    %98 = tpu.reciprocal %96 : vector<8x1xf32> -> vector<8x1xf32>
    %99 = vector.broadcast %98 : vector<8x1xf32> to vector<8x8xf32>
    %100 = arith.mulf %97, %99 : vector<8x8xf32>
    %c1_64 = arith.constant 1 : index
    %c0_65 = arith.constant 0 : index
    %c0_66 = arith.constant 0 : index
    %101 = vector.load %arg6[%c1_64, %c0_65, %c0_66] : memref<2x8x32xf32, #tpu.memory_space<vmem>>, vector<1x8x8xf32>
    %102 = vector.shape_cast %101 : vector<1x8x8xf32> to vector<8x8xf32>
    %103 = vector.shape_cast %100 : vector<8x8xf32> to vector<1x8x8xf32>
    tpu.vector_store %arg6[%c1_64, %c0_65, %c0_66], %103 {strides = array<i32>} : memref<2x8x32xf32, #tpu.memory_space<vmem>>, vector<1x8x8xf32>,
    %c1_67 = arith.constant 1 : index
    %c0_68 = arith.constant 0 : index
    %c8_69 = arith.constant 8 : index
    %104 = vector.load %arg2[%c1_67, %c0_68, %c8_69] : memref<2x8x32xf32, #tpu.memory_space<vmem>>, vector<1x8x8xf32>
    %105 = vector.shape_cast %104 : vector<1x8x8xf32> to vector<8x8xf32>
    %c1_70 = arith.constant 1 : index
    %c0_71 = arith.constant 0 : index
    %c8_72 = arith.constant 8 : index
    %106 = vector.load %arg3[%c1_70, %c0_71, %c8_72] : memref<2x8x32xf32, #tpu.memory_space<vmem>>, vector<1x8x8xf32>
    %107 = vector.shape_cast %106 : vector<1x8x8xf32> to vector<8x8xf32>
    %cst_73 = arith.constant dense<0.000000e+00> : vector<8x8xf32>
    %108 = tpu.matmul %105, %107, %cst_73 {dimension_numbers = #tpu.dot_dimension_numbers<[1], [1], [0], [0], [0, 0, 1, 0], [], []>} : vector<8x8xf32>, vector<8x8xf32>, vector<8x8xf32> -> vector<8x8xf32>
    %109 = arith.addf %108, %83 : vector<8x8xf32>
    %cst_74 = arith.constant dense<0xFF800000> : vector<8xf32>
    %110 = vector.multi_reduction <maximumf>, %109, %cst_74 [1] : vector<8x8xf32> to vector<8xf32>
    %111 = vector.shape_cast %110 : vector<8xf32> to vector<8x1xf32>
    %112 = vector.broadcast %111 : vector<8x1xf32> to vector<8x8xf32>
    %113 = arith.subf %109, %112 : vector<8x8xf32>
    %114 = math.exp %113 : vector<8x8xf32>
    %cst_75 = arith.constant dense<0.000000e+00> : vector<8xf32>
    %115 = vector.multi_reduction <add>, %114, %cst_75 [1] : vector<8x8xf32> to vector<8xf32>
    %116 = vector.shape_cast %115 : vector<8xf32> to vector<8x1xf32>
    %cst_76 = arith.constant dense<0.000000e+00> : vector<8x8xf32>
    %117 = tpu.matmul %114, %107, %cst_76 {dimension_numbers = #tpu.dot_dimension_numbers<[1], [0], [0], [1], [0, 0, 1, 1], [], []>} : vector<8x8xf32>, vector<8x8xf32>, vector<8x8xf32> -> vector<8x8xf32>
    %118 = tpu.reciprocal %116 : vector<8x1xf32> -> vector<8x1xf32>
    %119 = vector.broadcast %118 : vector<8x1xf32> to vector<8x8xf32>
    %120 = arith.mulf %117, %119 : vector<8x8xf32>
    %c1_77 = arith.constant 1 : index
    %c0_78 = arith.constant 0 : index
    %c8_79 = arith.constant 8 : index
    %121 = vector.load %arg6[%c1_77, %c0_78, %c8_79] : memref<2x8x32xf32, #tpu.memory_space<vmem>>, vector<1x8x8xf32>
    %122 = vector.shape_cast %121 : vector<1x8x8xf32> to vector<8x8xf32>
    %123 = vector.shape_cast %120 : vector<8x8xf32> to vector<1x8x8xf32>
    tpu.vector_store %arg6[%c1_77, %c0_78, %c8_79], %123 {strides = array<i32>} : memref<2x8x32xf32, #tpu.memory_space<vmem>>, vector<1x8x8xf32>,
    %c1_80 = arith.constant 1 : index
    %c0_81 = arith.constant 0 : index
    %c16_82 = arith.constant 16 : index
    %124 = vector.load %arg2[%c1_80, %c0_81, %c16_82] : memref<2x8x32xf32, #tpu.memory_space<vmem>>, vector<1x8x8xf32>
    %125 = vector.shape_cast %124 : vector<1x8x8xf32> to vector<8x8xf32>
    %c1_83 = arith.constant 1 : index
    %c0_84 = arith.constant 0 : index
    %c16_85 = arith.constant 16 : index
    %126 = vector.load %arg3[%c1_83, %c0_84, %c16_85] : memref<2x8x32xf32, #tpu.memory_space<vmem>>, vector<1x8x8xf32>
    %127 = vector.shape_cast %126 : vector<1x8x8xf32> to vector<8x8xf32>
    %cst_86 = arith.constant dense<0.000000e+00> : vector<8x8xf32>
    %128 = tpu.matmul %125, %127, %cst_86 {dimension_numbers = #tpu.dot_dimension_numbers<[1], [1], [0], [0], [0, 0, 1, 0], [], []>} : vector<8x8xf32>, vector<8x8xf32>, vector<8x8xf32> -> vector<8x8xf32>
    %129 = arith.addf %128, %83 : vector<8x8xf32>
    %cst_87 = arith.constant dense<0xFF800000> : vector<8xf32>
    %130 = vector.multi_reduction <maximumf>, %129, %cst_87 [1] : vector<8x8xf32> to vector<8xf32>
    %131 = vector.shape_cast %130 : vector<8xf32> to vector<8x1xf32>
    %132 = vector.broadcast %131 : vector<8x1xf32> to vector<8x8xf32>
    %133 = arith.subf %129, %132 : vector<8x8xf32>
    %134 = math.exp %133 : vector<8x8xf32>
    %cst_88 = arith.constant dense<0.000000e+00> : vector<8xf32>
    %135 = vector.multi_reduction <add>, %134, %cst_88 [1] : vector<8x8xf32> to vector<8xf32>
    %136 = vector.shape_cast %135 : vector<8xf32> to vector<8x1xf32>
    %cst_89 = arith.constant dense<0.000000e+00> : vector<8x8xf32>
    %137 = tpu.matmul %134, %127, %cst_89 {dimension_numbers = #tpu.dot_dimension_numbers<[1], [0], [0], [1], [0, 0, 1, 1], [], []>} : vector<8x8xf32>, vector<8x8xf32>, vector<8x8xf32> -> vector<8x8xf32>
    %138 = tpu.reciprocal %136 : vector<8x1xf32> -> vector<8x1xf32>
    %139 = vector.broadcast %138 : vector<8x1xf32> to vector<8x8xf32>
    %140 = arith.mulf %137, %139 : vector<8x8xf32>
    %c1_90 = arith.constant 1 : index
    %c0_91 = arith.constant 0 : index
    %c16_92 = arith.constant 16 : index
    %141 = vector.load %arg6[%c1_90, %c0_91, %c16_92] : memref<2x8x32xf32, #tpu.memory_space<vmem>>, vector<1x8x8xf32>
    %142 = vector.shape_cast %141 : vector<1x8x8xf32> to vector<8x8xf32>
    %143 = vector.shape_cast %140 : vector<8x8xf32> to vector<1x8x8xf32>
    tpu.vector_store %arg6[%c1_90, %c0_91, %c16_92], %143 {strides = array<i32>} : memref<2x8x32xf32, #tpu.memory_space<vmem>>, vector<1x8x8xf32>,
    %c1_93 = arith.constant 1 : index
    %c0_94 = arith.constant 0 : index
    %c24_95 = arith.constant 24 : index
    %144 = vector.load %arg2[%c1_93, %c0_94, %c24_95] : memref<2x8x32xf32, #tpu.memory_space<vmem>>, vector<1x8x8xf32>
    %145 = vector.shape_cast %144 : vector<1x8x8xf32> to vector<8x8xf32>
    %c1_96 = arith.constant 1 : index
    %c0_97 = arith.constant 0 : index
    %c24_98 = arith.constant 24 : index
    %146 = vector.load %arg3[%c1_96, %c0_97, %c24_98] : memref<2x8x32xf32, #tpu.memory_space<vmem>>, vector<1x8x8xf32>
    %147 = vector.shape_cast %146 : vector<1x8x8xf32> to vector<8x8xf32>
    %cst_99 = arith.constant dense<0.000000e+00> : vector<8x8xf32>
    %148 = tpu.matmul %145, %147, %cst_99 {dimension_numbers = #tpu.dot_dimension_numbers<[1], [1], [0], [0], [0, 0, 1, 0], [], []>} : vector<8x8xf32>, vector<8x8xf32>, vector<8x8xf32> -> vector<8x8xf32>
    %149 = arith.addf %148, %83 : vector<8x8xf32>
    %cst_100 = arith.constant dense<0xFF800000> : vector<8xf32>
    %150 = vector.multi_reduction <maximumf>, %149, %cst_100 [1] : vector<8x8xf32> to vector<8xf32>
    %151 = vector.shape_cast %150 : vector<8xf32> to vector<8x1xf32>
    %152 = vector.broadcast %151 : vector<8x1xf32> to vector<8x8xf32>
    %153 = arith.subf %149, %152 : vector<8x8xf32>
    %154 = math.exp %153 : vector<8x8xf32>
    %cst_101 = arith.constant dense<0.000000e+00> : vector<8xf32>
    %155 = vector.multi_reduction <add>, %154, %cst_101 [1] : vector<8x8xf32> to vector<8xf32>
    %156 = vector.shape_cast %155 : vector<8xf32> to vector<8x1xf32>
    %cst_102 = arith.constant dense<0.000000e+00> : vector<8x8xf32>
    %157 = tpu.matmul %154, %147, %cst_102 {dimension_numbers = #tpu.dot_dimension_numbers<[1], [0], [0], [1], [0, 0, 1, 1], [], []>} : vector<8x8xf32>, vector<8x8xf32>, vector<8x8xf32> -> vector<8x8xf32>
    %158 = tpu.reciprocal %156 : vector<8x1xf32> -> vector<8x1xf32>
    %159 = vector.broadcast %158 : vector<8x1xf32> to vector<8x8xf32>
    %160 = arith.mulf %157, %159 : vector<8x8xf32>
    %c1_103 = arith.constant 1 : index
    %c0_104 = arith.constant 0 : index
    %c24_105 = arith.constant 24 : index
    %161 = vector.load %arg6[%c1_103, %c0_104, %c24_105] : memref<2x8x32xf32, #tpu.memory_space<vmem>>, vector<1x8x8xf32>
    %162 = vector.shape_cast %161 : vector<1x8x8xf32> to vector<8x8xf32>
    %163 = vector.shape_cast %160 : vector<8x8xf32> to vector<1x8x8xf32>
    tpu.vector_store %arg6[%c1_103, %c0_104, %c24_105], %163 {strides = array<i32>} : memref<2x8x32xf32, #tpu.memory_space<vmem>>, vector<1x8x8xf32>,
    %c0_106 = arith.constant 0 : index
    %c0_107 = arith.constant 0 : index
    %c0_108 = arith.constant 0 : index
    %164 = vector.load %arg6[%c0_106, %c0_107, %c0_108] : memref<2x8x32xf32, #tpu.memory_space<vmem>>, vector<2x8x32xf32>
    %c0_109 = arith.constant 0 : index
    %c0_110 = arith.constant 0 : index
    %c0_111 = arith.constant 0 : index
    %165 = vector.load %arg5[%c0_109, %c0_110, %c0_111] : memref<2x8x32xf32, #tpu.memory_space<vmem>>, vector<2x8x32xf32>
    tpu.vector_store %arg5[%c0_109, %c0_110, %c0_111], %164 {strides = array<i32>} : memref<2x8x32xf32, #tpu.memory_space<vmem>>, vector<2x8x32xf32>,
    return
  }
  func.func @transform_0(%arg0: i32, %arg1: i32) -> (i32, i32, i32) {
    %c0_i32 = arith.constant 0 : i32
    %c0_i32_0 = arith.constant 0 : i32
    return %arg0, %arg1, %c0_i32 : i32, i32, i32
  }
  func.func @transform_1(%arg0: i32, %arg1: i32) -> (i32, i32, i32) {
    %c0_i32 = arith.constant 0 : i32
    %c0_i32_0 = arith.constant 0 : i32
    %c0_i32_1 = arith.constant 0 : i32
    return %arg0, %c0_i32, %c0_i32_0 : i32, i32, i32
  }
  func.func @transform_2(%arg0: i32, %arg1: i32) -> (i32, i32, i32, i32) {
    %c0_i32 = arith.constant 0 : i32
    %c0_i32_0 = arith.constant 0 : i32
    %c0_i32_1 = arith.constant 0 : i32
    return %arg0, %c0_i32, %arg1, %c0_i32_0 : i32, i32, i32, i32
  }
  func.func @transform_3(%arg0: i32, %arg1: i32) -> (i32, i32, i32) {
    %c0_i32 = arith.constant 0 : i32
    %c0_i32_0 = arith.constant 0 : i32
    return %arg0, %arg1, %c0_i32 : i32, i32, i32
  }
}

</mosaic_0001>

<bundles_post_ra>
// kernel: tpu_custom_call.1
= control target key start
LH: loop header
LB: loop body
LE: loop exit
PB: predicated region body
PF: predicated region fallthrough
CT: control target
= control target key end

     0   :  { %8 = vsyncpa [#allocation4], 0  ;;  %s1060_s0 = inlined_call_operand.hbm [shape: f32[2,8,32], index: 0, kind: input, shape index: {}]   ;;  %s1061_s1 = inlined_call_operand.hbm [shape: f32[2,8,32], index: 1, kind: input, shape index: {}]   ;;  %s1062_s2 = inlined_call_operand.hbm [shape: f32[2,1,8,8], index: 2, kind: input, shape index: {}]   ;;  %s1063_s3 = inlined_call_operand.hbm [shape: f32[2,8,32], index: 3, kind: output, shape index: {}]  }
   0x1   :  { %9 = vsyncpa [#allocation7], 0 }
   0x2   :  { %10 = vsyncpa [#allocation5], 0  ;;  %s28_s14 = sshll.u32 %s1061_s1, 4  ;;  %s928_s15 = smov [#allocation6]   ;;  %s29_s14 = int_to_ptr.hbm [resolvable:$true] %s28_s14 }
   0x3   :  { %s30_s16 = sshll.u32 %s928_s15, 4  ;;  %s15_s19 = sshll.u32 %s1060_s0, 4  ;;  %s31_s16 = int_to_ptr.vmem [resolvable:$true] %s30_s16  ;;  %s16_s19 = int_to_ptr.hbm [resolvable:$true] %s15_s19 }
   0x4   :  { %s929_s20 = smov 128   ;;  %s930_s21 = smov 8  }
   0x5   :  { %36 = dma.hbm_to_vmem [thread:$0]  %s29_s14, 256, %s31_s16, [#allocation7], %s929_s20, %s929_s20, %s930_s21  }
   0x6   :  { %s931_s22 = smov [#allocation3]   ;;  %s41_s1 = sshll.u32 %s1062_s2, 4  ;;  %s42_s1 = int_to_ptr.hbm [resolvable:$true] %s41_s1 }
   0x7   :  { %s17_s23 = sshll.u32 %s931_s22, 4  ;;  %s932_s0 = smov [#allocation8]   ;;  %s18_s23 = int_to_ptr.vmem [resolvable:$true] %s17_s23 }
   0x8   :  { %23 = dma.hbm_to_vmem [thread:$0]  %s16_s19, 256, %s18_s23, [#allocation4], %s929_s20, %s929_s20, %s930_s21  }
   0x9   :  { %s43_s26 = sshll.u32 %s932_s0, 4  ;;  %s44_s26 = int_to_ptr.vmem [resolvable:$true] %s43_s26 }
   0xa   :  { %49 = dma.hbm_to_vmem [thread:$0]  %s42_s1, 256, %s44_s26, [#allocation7], %s929_s20, %s929_s20, %s930_s21  }
   0xb   :  { %922 = dma.done.wait [#allocation4], 256  }
   0xc   :  { %923 = vsyncadd [#allocation4], 4294967040 }
   0xd   :  { %924 = dma.done.wait [#allocation7], 512  }
   0xe   :  { %925 = vsyncadd [#allocation7], 4294966784  ;;  %vm65_vm0 = vcmask 64512   ;;  %v140_v0 = vld [vmem:[#allocation3] sm:$0xff]  ;;  %v64_v1 = vld [vmem:[#allocation6] sm:$0xff]  ;;  %s933_s2 = smov 120  }
   0xf   :  { %143 = vrot.lane.b32.xlu1 %v140_v0, %s933_s2  ;;  %759 = vmatpush.xpose.msk.msra.mxu0 %vm65_vm0, %v64_v1  ;;  %s934_s27 = smov 104   ;;  %s935_s28 = smov 112   ;;  %v980_v2 = vld [vmem:[#allocation6 + $0x8] sm:$0xff]  ;;  %v479_v3 = vld [vmem:[#allocation3 + $0x8] sm:$0xff]  ;;  %v991_v10 = vld [vmem:[#allocation8] sm:$0xff] }
  0x10   :  { %146 = vrot.lane.b32.xlu0 %v64_v1, %s933_s2  ;;  %318 = vrot.lane.b32.xlu2 %v64_v1, %s934_s27  ;;  %v1008_v27 = vld [vmem:[#allocation8 + $0x8] sm:$0xff]  ;;  %s936_s29 = smov 24   ;;  %s937_s30 = smov 16  }
  0x11   :  { %119 = vmatpush.msra.mxu1 %v64_v1  ;;  %s938_s4 = smov [#allocation9]   ;;  %s745_s8 = sshll.u32 %s1063_s3, 4  ;;  %s746_s8 = int_to_ptr.hbm [resolvable:$true] %s745_s8 }
  0x12   :  { %760 = vmatmul.msk.f32.vlgmr.msra.gmra.mxu0 %vm65_vm0, %v140_v0  ;;  %s743_s5 = sshll.u32 %s938_s4, 4  ;;  %s744_s5 = int_to_ptr.vmem [resolvable:$true] %s743_s5 }
  0x17   :  { %232 = vrot.lane.b32.xlu1 %v64_v1, %s935_s28 }
  0x18   :  { %229 = vrot.lane.b32.xlu2 %v140_v0, %s935_s28 }
  0x1f   :  { %315 = vrot.lane.b32.xlu1 %v140_v0, %s934_s27 }
  0x20   :  { %485 = vrot.lane.b32.xlu2 %v980_v2, %s933_s2 }
  0x27   :  { %482 = vrot.lane.b32.xlu1 %v479_v3, %s933_s2 }
  0x28   :  { %570 = vrot.lane.b32.xlu2 %v980_v2, %s935_s28 }
  0x2f   :  { %567 = vrot.lane.b32.xlu1 %v479_v3, %s935_s28 }
  0x30   :  { %652 = vrot.lane.b32.xlu2 %v479_v3, %s934_s27 }
  0x6a   :  { %v319_v4 = vpop.permute.xlu2 %318 }
  0x6b   :  { %768 = vmatpush.xpose.msk.msrb.mxu0 %vm65_vm0, %v319_v4 }
  0x72   :  { %v230_v5 = vpop.permute.xlu2 %229 }
  0x7a   :  { %v486_v6 = vpop.permute.xlu2 %485 }
  0x7b   :  { %774 = vmatpush.xpose.msk.msra.mxu0 %vm65_vm0, %v486_v6 }
  0x81   :  { %v144_v7 = vpop.permute.xlu1 %143 }
  0x82   :  { %v147_v8 = vpop.permute.xlu0 %146  ;;  %v1002_v24 = vpop.permute.xlu2 %570 }
  0x83   :  { %762 = vmatpush.xpose.msk.msra.mxu2 %vm65_vm0, %v147_v8  ;;  %200 = vmatpush.msra.mxu3 %v147_v8 }
  0x86   :  { %763 = vmatmul.msk.f32.vlgmr.msra.gmra.mxu2 %vm65_vm0, %v144_v7 }
  0x87   :  { %372 = vmatpush.msrb.mxu2 %v319_v4 }
  0x89   :  { %539 = vmatpush.msra.mxu2 %v486_v6  ;;  %v233_v9 = vpop.permute.xlu1 %232 }
  0x8a   :  { %765 = vmatpush.xpose.msk.msrb.mxu1 %vm65_vm0, %v233_v9  ;;  %286 = vmatpush.msrb.mxu3 %v233_v9  ;;  %v653_v32 = vpop.permute.xlu2 %652 }
  0x8f   :  { %v89_v11 = vpop.f32.mrf.mxu0 }
  0x90   :  { %v90_v12 = vadd.f32 %v89_v11, %v991_v10 }
  0x91   :  { %v316_v13 = vpop.permute.xlu1 %315 }
  0x92   :  { %769 = vmatmul.msk.f32.vlgmr.msrb.gmra.mxu0 %vm65_vm0, %v316_v13  ;;  %v92_v14 = vsel %vm65_vm0, %v90_v12, -inf }
  0x93   :  { %93 = vmax.xlane.f32.xlu0 %v92_v14 }
  0x99   :  { %v483_v15 = vpop.permute.xlu1 %482 }
  0x9a   :  { %775 = vmatmul.msk.f32.vlgmr.msra.gmra.mxu0 %vm65_vm0, %v483_v15 }
  0xa1   :  { %v568_v34 = vpop.permute.xlu1 %567 }
  0xa7   :  { %655 = vrot.lane.b32.xlu0 %v980_v2, %s934_s27 }
 0x106   :  { %v94_v16 = vpop.xlane.xlu0 %93 }
 0x107   :  { %v95_v17 = vsub.f32 %v90_v12, %v94_v16 }
 0x109   :  { %v96_v18 = vmul.f32 1.442695, %v95_v17  ;;  %v169_v19 = vpop.f32.mrf.mxu2 }
 0x10a   :  { %v170_v20 = vadd.f32 %v169_v19, %v991_v10 }
 0x10b   :  { %794 = vpow2.f32 %v96_v18 }
 0x10c   :  { %v172_v21 = vsel %vm65_vm0, %v170_v20, -inf }
 0x10d   :  { %173 = vmax.xlane.f32.xlu0 %v172_v21 }
 0x10f   :  { %v341_v22 = vpop.f32.mrf.mxu0 }
 0x110   :  { %v342_v23 = vadd.f32 %v341_v22, %v991_v10 }
 0x111   :  { %v795_v25 = vpop.eup %794 }
 0x112   :  { %761 = vmatmul.msk.f32.vlgmr.msra.gmra.mxu1 %vm65_vm0, %v795_v25  ;;  %v344_v26 = vsel %vm65_vm0, %v342_v23, -inf  ;;  %v98_v33 = vsel %vm65_vm0, %v795_v25, 0.0 }
 0x113   :  { %345 = vmax.xlane.f32.xlu2 %v344_v26  ;;  %771 = vmatpush.xpose.msk.msra.mxu1 %vm65_vm0, %v980_v2 }
 0x117   :  { %v508_v28 = vpop.f32.mrf.mxu0 }
 0x118   :  { %v509_v29 = vadd.f32 %v508_v28, %v1008_v27 }
 0x119   :  { %v656_v30 = vpop.permute.xlu0 %655 }
 0x11a   :  { %766 = vmatmul.msk.f32.vlgmr.msrb.gmra.mxu1 %vm65_vm0, %v230_v5  ;;  %v511_v31 = vsel %vm65_vm0, %v509_v29, -inf  ;;  %780 = vmatpush.xpose.msk.msrb.mxu0 %vm65_vm0, %v656_v30 }
 0x11b   :  { %512 = vmax.xlane.f32.xlu2 %v511_v31  ;;  %777 = vmatpush.xpose.msk.msrb.mxu1 %vm65_vm0, %v1002_v24 }
 0x11d   :  { %781 = vmatmul.msk.f32.vlgmr.msrb.gmra.mxu0 %vm65_vm0, %v653_v32 }
 0x122   :  { %772 = vmatmul.msk.f32.vlgmr.msra.gmra.mxu1 %vm65_vm0, %v479_v3 }
 0x123   :  { %99 = vadd.xlane.f32.xlu2 %v98_v33 }
 0x12a   :  { %778 = vmatmul.msk.f32.vlgmr.msrb.gmra.mxu1 %vm65_vm0, %v568_v34 }
 0x180   :  { %v174_v35 = vpop.xlane.xlu0 %173 }
 0x181   :  { %v175_v36 = vsub.f32 %v170_v20, %v174_v35 }
 0x183   :  { %v176_v37 = vmul.f32 1.442695, %v175_v36 }
 0x185   :  { %796 = vpow2.f32 %v176_v37 }
 0x186   :  { %v346_v38 = vpop.xlane.xlu2 %345 }
 0x187   :  { %v347_v39 = vsub.f32 %v342_v23, %v346_v38 }
 0x189   :  { %v348_v40 = vmul.f32 1.442695, %v347_v39 }
 0x18b   :  { %v797_v41 = vpop.eup %796  ;;  %798 = vpow2.f32 %v348_v40 }
 0x18c   :  { %764 = vmatmul.msk.f32.vlgmr.msra.gmra.mxu3 %vm65_vm0, %v797_v41  ;;  %v178_v8 = vsel %vm65_vm0, %v797_v41, 0.0 }
 0x18d   :  { %457 = vmatpush.msra.mxu3 %v980_v2 }
 0x18e   :  { %v513_v42 = vpop.xlane.xlu2 %512 }
 0x18f   :  { %v514_v43 = vsub.f32 %v509_v29, %v513_v42  ;;  %v121_v44 = vpop.f32.mrf.mxu1 }
 0x191   :  { %v799_v45 = vpop.eup %798  ;;  %v515_v46 = vmul.f32 1.442695, %v514_v43 }
 0x192   :  { %770 = vmatmul.msk.f32.vlgmr.msrb.gmra.mxu2 %vm65_vm0, %v799_v45 }
 0x193   :  { %800 = vpow2.f32 %v515_v46  ;;  %709 = vmatpush.msrb.mxu2 %v656_v30 }
 0x196   :  { %v100_v47 = vpop.xlane.xlu2 %99 }
 0x197   :  { %802 = vrcp.f32 %v100_v47  ;;  %v255_v48 = vpop.f32.mrf.mxu1  ;;  %v135_v57 = vand.u32 2147483648, %v100_v47  ;;  %v133_v60 = vand.u32 2147483647, %v100_v47  ;;  %vm129_vm2 = vweird.f32 %v100_v47 }
 0x198   :  { %v256_v49 = vadd.f32 %v255_v48, %v991_v10  ;;  %v350_v10 = vsel %vm65_vm0, %v799_v45, 0.0 }
 0x199   :  { %v801_v50 = vpop.eup %800  ;;  %v136_v0 = vor.u32 1.1754944e-38, %v135_v57  ;;  %vm134_vm4 = vcmp.eq.f32.partialorder %v133_v60, 8.507059e+37 }
 0x19a   :  { %v258_v51 = vsel %vm65_vm0, %v256_v49, -inf  ;;  %776 = vmatmul.msk.f32.vlgmr.msra.gmra.mxu2 %vm65_vm0, %v801_v50  ;;  %v678_v58 = vpop.f32.mrf.mxu0  ;;  %v517_v9 = vsel %vm65_vm0, %v801_v50, 0.0 }
 0x19b   :  { %259 = vmax.xlane.f32.xlu1 %v258_v51  ;;  %v679_v63 = vadd.f32 %v678_v58, %v1008_v27 }
 0x19d   :  { %v803_v52 = vpop.eup %802  ;;  %v681_v5 = vsel %vm65_vm0, %v679_v63, -inf }
 0x19e   :  { %v125_v53 = vmul.f32 %v803_v52, %v100_v47  ;;  %vm130_vm1 = vweird.f32 %v803_v52 }
 0x19f   :  { %v427_v54 = vpop.f32.mrf.mxu1  ;;  %vm131_vm3 = vmor %vm129_vm2, %vm130_vm1 }
 0x1a0   :  { %v126_v55 = vsub.f32 1.0, %v125_v53  ;;  %v428_v56 = vadd.f32 %v427_v54, %v1008_v27 }
 0x1a2   :  { %v127_v59 = vmul.f32 %v803_v52, %v126_v55  ;;  %v430_v61 = vsel %vm65_vm0, %v428_v56, -inf }
 0x1a3   :  { %431 = vmax.xlane.f32.xlu0 %v430_v61 }
 0x1a4   :  { %v128_v62 = vadd.f32 %v803_v52, %v127_v59 }
 0x1a6   :  { %v132_v1 = vsel %vm131_vm3, %v803_v52, %v128_v62 }
 0x1a7   :  { %v137_v2 = vsel %vm134_vm4, %v136_v0, %v132_v1  ;;  %v593_v3 = vpop.f32.mrf.mxu1 }
 0x1a8   :  { %v594_v4 = vadd.f32 %v593_v3, %v1008_v27  ;;  %v138_v6 = vmul.f32 %v137_v2, %v121_v44 }
 0x1aa   :  { %v596_v7 = vsel %vm65_vm0, %v594_v4, -inf  ;;  %139 = vst.msk [vmem:[#allocation2] sm:$0xff] %vm65_vm0, %v138_v6 }
 0x1ab   :  { %597 = vmax.xlane.f32.xlu1 %v596_v7  ;;  %682 = vmax.xlane.f32.xlu0 %v681_v5 }
 0x1b3   :  { %179 = vadd.xlane.f32.xlu1 %v178_v8 }
 0x1bb   :  { %518 = vadd.xlane.f32.xlu1 %v517_v9 }
 0x1c3   :  { %351 = vadd.xlane.f32.xlu1 %v350_v10 }
 0x20e   :  { %v260_v11 = vpop.xlane.xlu1 %259 }
 0x20f   :  { %v261_v12 = vsub.f32 %v256_v49, %v260_v11  ;;  %v202_v45 = vpop.f32.mrf.mxu3 }
 0x211   :  { %v262_v13 = vmul.f32 1.442695, %v261_v12 }
 0x213   :  { %804 = vpow2.f32 %v262_v13 }
 0x215   :  { %v374_v40 = vpop.f32.mrf.mxu2 }
 0x216   :  { %v432_v14 = vpop.xlane.xlu0 %431 }
 0x217   :  { %v433_v15 = vsub.f32 %v428_v56, %v432_v14 }
 0x219   :  { %v805_v16 = vpop.eup %804  ;;  %v434_v17 = vmul.f32 1.442695, %v433_v15 }
 0x21a   :  { %767 = vmatmul.msk.f32.vlgmr.msrb.gmra.mxu3 %vm65_vm0, %v805_v16  ;;  %v264_v18 = vsel %vm65_vm0, %v805_v16, 0.0 }
 0x21b   :  { %806 = vpow2.f32 %v434_v17  ;;  %624 = vmatpush.msrb.mxu3 %v1002_v24  ;;  %265 = vadd.xlane.f32.xlu2 %v264_v18 }
 0x21d   :  { %v541_v58 = vpop.f32.mrf.mxu2 }
 0x21e   :  { %v598_v19 = vpop.xlane.xlu1 %597  ;;  %v683_v20 = vpop.xlane.xlu0 %682 }
 0x21f   :  { %v599_v21 = vsub.f32 %v594_v4, %v598_v19  ;;  %v684_v22 = vsub.f32 %v679_v63, %v683_v20 }
 0x221   :  { %v807_v23 = vpop.eup %806  ;;  %v600_v25 = vmul.f32 1.442695, %v599_v21  ;;  %v685_v26 = vmul.f32 1.442695, %v684_v22 }
 0x222   :  { %773 = vmatmul.msk.f32.vlgmr.msra.gmra.mxu3 %vm65_vm0, %v807_v23  ;;  %v436_v52 = vsel %vm65_vm0, %v807_v23, 0.0 }
 0x223   :  { %808 = vpow2.f32 %v600_v25 }
 0x224   :  { %810 = vpow2.f32 %v685_v26 }
 0x226   :  { %v180_v27 = vpop.xlane.xlu1 %179 }
 0x227   :  { %812 = vrcp.f32 %v180_v27  ;;  %v216_v34 = vand.u32 2147483648, %v180_v27  ;;  %v214_v37 = vand.u32 2147483647, %v180_v27  ;;  %vm210_vm6 = vweird.f32 %v180_v27 }
 0x229   :  { %v809_v28 = vpop.eup %808  ;;  %v217_v41 = vor.u32 1.1754944e-38, %v216_v34  ;;  %vm215_vm8 = vcmp.eq.f32.partialorder %v214_v37, 8.507059e+37 }
 0x22a   :  { %v811_v29 = vpop.eup %810  ;;  %779 = vmatmul.msk.f32.vlgmr.msrb.gmra.mxu3 %vm65_vm0, %v809_v28  ;;  %v602_v24 = vsel %vm65_vm0, %v809_v28, 0.0 }
 0x22b   :  { %782 = vmatmul.msk.f32.vlgmr.msrb.gmra.mxu2 %vm65_vm0, %v811_v29  ;;  %603 = vadd.xlane.f32.xlu2 %v602_v24  ;;  %v687_v36 = vsel %vm65_vm0, %v811_v29, 0.0 }
 0x22d   :  { %v813_v30 = vpop.eup %812 }
 0x22e   :  { %v206_v31 = vmul.f32 %v813_v30, %v180_v27  ;;  %v519_v32 = vpop.xlane.xlu1 %518  ;;  %vm211_vm5 = vweird.f32 %v813_v30 }
 0x22f   :  { %814 = vrcp.f32 %v519_v32  ;;  %vm212_vm7 = vmor %vm210_vm6, %vm211_vm5  ;;  %v555_v49 = vand.u32 2147483648, %v519_v32  ;;  %v553_v51 = vand.u32 2147483647, %v519_v32  ;;  %vm549_vm10 = vweird.f32 %v519_v32 }
 0x230   :  { %v207_v33 = vsub.f32 1.0, %v206_v31  ;;  %vm224_vm6 = vcmask 130112  }
 0x231   :  { %v556_v55 = vor.u32 1.1754944e-38, %v555_v49  ;;  %vm554_vm12 = vcmp.eq.f32.partialorder %v553_v51, 8.507059e+37 }
 0x232   :  { %v208_v35 = vmul.f32 %v813_v30, %v207_v33 }
 0x233   :  { %688 = vadd.xlane.f32.xlu2 %v687_v36 }
 0x234   :  { %v209_v38 = vadd.f32 %v813_v30, %v208_v35 }
 0x235   :  { %v815_v39 = vpop.eup %814 }
 0x236   :  { %v545_v42 = vmul.f32 %v815_v39, %v519_v32  ;;  %v352_v43 = vpop.xlane.xlu1 %351  ;;  %v213_v44 = vsel %vm212_vm7, %v813_v30, %v209_v38  ;;  %vm550_vm9 = vweird.f32 %v815_v39 }
 0x237   :  { %816 = vrcp.f32 %v352_v43  ;;  %v218_v46 = vsel %vm215_vm8, %v217_v41, %v213_v44  ;;  %vm551_vm11 = vmor %vm549_vm10, %vm550_vm9  ;;  %v388_v62 = vand.u32 2147483648, %v352_v43  ;;  %v386_v0 = vand.u32 2147483647, %v352_v43 }
 0x238   :  { %v546_v47 = vsub.f32 1.0, %v545_v42  ;;  %v219_v48 = vmul.f32 %v218_v46, %v202_v45  ;;  %vm382_vm14 = vweird.f32 %v352_v43 }
 0x239   :  { %v389_v2 = vor.u32 1.1754944e-38, %v388_v62  ;;  %vm387_vm1 = vcmp.eq.f32.partialorder %v386_v0, 8.507059e+37 }
 0x23a   :  { %v547_v50 = vmul.f32 %v815_v39, %v546_v47  ;;  %221 = vrot.lane.b32.xlu0 %v219_v48, %s930_s21 }
 0x23b   :  { %437 = vadd.xlane.f32.xlu2 %v436_v52 }
 0x23c   :  { %v548_v53 = vadd.f32 %v815_v39, %v547_v50 }
 0x23d   :  { %v817_v54 = vpop.eup %816 }
 0x23e   :  { %v552_v56 = vsel %vm551_vm11, %v815_v39, %v548_v53  ;;  %v378_v57 = vmul.f32 %v817_v54, %v352_v43  ;;  %vm383_vm13 = vweird.f32 %v817_v54 }
 0x23f   :  { %v557_v59 = vsel %vm554_vm12, %v556_v55, %v552_v56  ;;  %vm384_vm15 = vmor %vm382_vm14, %vm383_vm13 }
 0x240   :  { %v558_v60 = vmul.f32 %v557_v59, %v541_v58  ;;  %v379_v61 = vsub.f32 1.0, %v378_v57 }
 0x242   :  { %v380_v63 = vmul.f32 %v817_v54, %v379_v61  ;;  %560 = vrot.lane.b32.xlu0 %v558_v60, %s930_s21 }
 0x244   :  { %v381_v1 = vadd.f32 %v817_v54, %v380_v63 }
 0x246   :  { %v385_v3 = vsel %vm384_vm15, %v817_v54, %v381_v1 }
 0x247   :  { %v390_v4 = vsel %vm387_vm1, %v389_v2, %v385_v3 }
 0x248   :  { %v391_v5 = vmul.f32 %v390_v4, %v374_v40 }
 0x24a   :  { %393 = vrot.lane.b32.xlu1 %v391_v5, %s936_s29 }
 0x28e   :  { %v266_v6 = vpop.xlane.xlu2 %265 }
 0x28f   :  { %818 = vrcp.f32 %v266_v6  ;;  %v302_v10 = vand.u32 2147483648, %v266_v6  ;;  %v300_v12 = vand.u32 2147483647, %v266_v6  ;;  %vm296_vm3 = vweird.f32 %v266_v6 }
 0x291   :  { %v303_v15 = vor.u32 1.1754944e-38, %v302_v10  ;;  %vm301_vm5 = vcmp.eq.f32.partialorder %v300_v12, 8.507059e+37 }
 0x295   :  { %v819_v7 = vpop.eup %818 }
 0x296   :  { %v292_v8 = vmul.f32 %v819_v7, %v266_v6  ;;  %vm297_vm2 = vweird.f32 %v819_v7 }
 0x297   :  { %vm298_vm4 = vmor %vm296_vm3, %vm297_vm2 }
 0x298   :  { %v293_v9 = vsub.f32 1.0, %v292_v8 }
 0x29a   :  { %v294_v11 = vmul.f32 %v819_v7, %v293_v9 }
 0x29c   :  { %v295_v13 = vadd.f32 %v819_v7, %v294_v11 }
 0x29d   :  { %v288_v14 = vpop.f32.mrf.mxu3 }
 0x29e   :  { %v299_v16 = vsel %vm298_vm4, %v819_v7, %v295_v13  ;;  %v604_v17 = vpop.xlane.xlu2 %603  ;;  %vm310_vm4 = vcmask 195712  }
 0x29f   :  { %v304_v18 = vsel %vm301_vm5, %v303_v15, %v299_v16  ;;  %820 = vrcp.f32 %v604_v17  ;;  %v640_v26 = vand.u32 2147483648, %v604_v17  ;;  %v638_v28 = vand.u32 2147483647, %v604_v17 }
 0x2a0   :  { %v305_v19 = vmul.f32 %v304_v18, %v288_v14  ;;  %vm634_vm8 = vweird.f32 %v604_v17  ;;  %vm396_vm5 = vcmask 261312  }
 0x2a1   :  { %v641_v31 = vor.u32 1.1754944e-38, %v640_v26  ;;  %vm639_vm10 = vcmp.eq.f32.partialorder %v638_v28, 8.507059e+37 }
 0x2a2   :  { %307 = vrot.lane.b32.xlu0 %v305_v19, %s937_s30 }
 0x2a5   :  { %v821_v20 = vpop.eup %820  ;;  %v459_v21 = vpop.f32.mrf.mxu3 }
 0x2a6   :  { %v630_v22 = vmul.f32 %v821_v20, %v604_v17  ;;  %v689_v23 = vpop.xlane.xlu2 %688  ;;  %vm635_vm7 = vweird.f32 %v821_v20 }
 0x2a7   :  { %822 = vrcp.f32 %v689_v23  ;;  %vm636_vm9 = vmor %vm634_vm8, %vm635_vm7  ;;  %v725_v39 = vand.u32 2147483648, %v689_v23  ;;  %v723_v41 = vand.u32 2147483647, %v689_v23  ;;  %vm719_vm12 = vweird.f32 %v689_v23 }
 0x2a8   :  { %v631_v25 = vsub.f32 1.0, %v630_v22  ;;  %vm736_vm7 = vcmask 261120  }
 0x2a9   :  { %v726_v44 = vor.u32 1.1754944e-38, %v725_v39  ;;  %vm724_vm14 = vcmp.eq.f32.partialorder %v723_v41, 8.507059e+37 }
 0x2aa   :  { %v632_v27 = vmul.f32 %v821_v20, %v631_v25 }
 0x2ac   :  { %v222_v29 = vpop.permute.xlu0 %221  ;;  %v633_v24 = vadd.f32 %v821_v20, %v632_v27 }
 0x2ad   :  { %v823_v30 = vpop.eup %822  ;;  %225 = vst.msk [vmem:[#allocation2] sm:$0xff] %vm224_vm6, %v222_v29  ;;  %v626_v35 = vpop.f32.mrf.mxu3 }
 0x2ae   :  { %v715_v32 = vmul.f32 %v823_v30, %v689_v23  ;;  %v637_v33 = vsel %vm636_vm9, %v821_v20, %v633_v24  ;;  %v438_v34 = vpop.xlane.xlu2 %437  ;;  %vm720_vm11 = vweird.f32 %v823_v30  ;;  %v711_v47 = vpop.f32.mrf.mxu2 }
 0x2af   :  { %v642_v36 = vsel %vm639_vm10, %v641_v31, %v637_v33  ;;  %824 = vrcp.f32 %v438_v34  ;;  %vm721_vm13 = vmor %vm719_vm12, %vm720_vm11  ;;  %v473_v51 = vand.u32 2147483648, %v438_v34  ;;  %v471_v53 = vand.u32 2147483647, %v438_v34 }
 0x2b0   :  { %v716_v37 = vsub.f32 1.0, %v715_v32  ;;  %v643_v38 = vmul.f32 %v642_v36, %v626_v35  ;;  %vm467_vm1 = vweird.f32 %v438_v34 }
 0x2b1   :  { %v474_v55 = vor.u32 1.1754944e-38, %v473_v51  ;;  %vm472_vm3 = vcmp.eq.f32.partialorder %v471_v53, 8.507059e+37 }
 0x2b2   :  { %v717_v40 = vmul.f32 %v823_v30, %v716_v37  ;;  %645 = vrot.lane.b32.xlu2 %v643_v38, %s937_s30 }
 0x2b4   :  { %v718_v42 = vadd.f32 %v823_v30, %v717_v40  ;;  %v561_v59 = vpop.permute.xlu0 %560 }
 0x2b5   :  { %v825_v43 = vpop.eup %824 }
 0x2b6   :  { %v722_v45 = vsel %vm721_vm13, %v823_v30, %v718_v42  ;;  %v463_v46 = vmul.f32 %v825_v43, %v438_v34  ;;  %vm468_vm15 = vweird.f32 %v825_v43 }
 0x2b7   :  { %v727_v48 = vsel %vm724_vm14, %v726_v44, %v722_v45  ;;  %vm469_vm2 = vmor %vm467_vm1, %vm468_vm15 }
 0x2b8   :  { %v728_v49 = vmul.f32 %v727_v48, %v711_v47  ;;  %v464_v50 = vsub.f32 1.0, %v463_v46 }
 0x2ba   :  { %v465_v52 = vmul.f32 %v825_v43, %v464_v50  ;;  %730 = vrot.lane.b32.xlu0 %v728_v49, %s936_s29 }
 0x2bc   :  { %v466_v54 = vadd.f32 %v825_v43, %v465_v52  ;;  %v394_v62 = vpop.permute.xlu1 %393 }
 0x2be   :  { %v470_v56 = vsel %vm469_vm2, %v825_v43, %v466_v54 }
 0x2bf   :  { %v475_v57 = vsel %vm472_vm3, %v474_v55, %v470_v56 }
 0x2c0   :  { %v476_v58 = vmul.f32 %v475_v57, %v459_v21 }
 0x2c2   :  { %478 = vst.msk [vmem:[#allocation2 + $0x8] sm:$0xff] %vm65_vm0, %v476_v58 }
 0x2c3   :  { %563 = vst.msk [vmem:[#allocation2 + $0x8] sm:$0xff] %vm224_vm6, %v561_v59 }
 0x30c   :  { %v646_v60 = vpop.permute.xlu2 %645 }
 0x30d   :  { %648 = vst.msk [vmem:[#allocation2 + $0x8] sm:$0xff] %vm310_vm4, %v646_v60 }
 0x314   :  { %v308_v61 = vpop.permute.xlu0 %307 }
 0x315   :  { %311 = vst.msk [vmem:[#allocation2] sm:$0xff] %vm310_vm4, %v308_v61 }
 0x316   :  { %397 = vst.msk [vmem:[#allocation2] sm:$0xff] %vm396_vm5, %v394_v62 }
 0x31d   :  { %v734_v63 = vld [vmem:[#allocation2] sm:$0xff] }
 0x31e   :  { %737 = vst.msk [vmem:[#allocation9] sm:$0xff] %vm736_vm7, %v734_v63 }
 0x32c   :  { %v731_v0 = vpop.permute.xlu0 %730 }
 0x32d   :  { %733 = vst.msk [vmem:[#allocation2 + $0x8] sm:$0xff] %vm396_vm5, %v731_v0 }
 0x334   :  { %v735_v1 = vld [vmem:[#allocation2 + $0x8] sm:$0xff] }
 0x335   :  { %738 = vst.msk [vmem:[#allocation9 + $0x8] sm:$0xff] %vm736_vm7, %v735_v1 }
 0x336   :  { %751 = dma.vmem_to_hbm [thread:$0]  %s744_s5, 256, %s746_s8, [#allocation5], %s929_s20, %s929_s20, %s930_s21  }
 0x337   :  { %926 = dma.done.wait [#allocation5], 256  }
 0x338   :  { %927 = vsyncadd [#allocation5], 4294967040 }
 0x339   :  { %756 = vsyncpa [#allocation4], 1 }
 0x33a   :  { %757 = vsyncpa [#allocation7], 1 }
 0x33b   :  { %758 = vsyncpa [#allocation5], 1 }

</bundles_post_ra>
